<compile_context>
chip_gen: v7x
topology: tpu7x:2x2x1
jax: 0.10.0
libtpu: 0.0.40
codegen_flags: <defaults>
</compile_context>

<pallas_src>
import functools
import math

import jax
import jax.numpy as jnp
from jax.experimental import pallas as pl
from jax.experimental.pallas import tpu as pltpu


def _rmsnorm_kernel(x_ref, w_ref, o_ref, *, eps, inv_dim, exact_cast):
    """Standard path: each logical row owns the whole lane axis (dim % 128 == 0 or unfoldable)."""
    x = x_ref[...].astype(jnp.float32)                        # (tr, dim)
    ss = jnp.sum(x * x, axis=-1, keepdims=True)               # (tr, 1)   XLU reduce
    inv = jax.lax.rsqrt(ss * inv_dim + eps)                   # EUP slot, ~free
    if exact_cast:
        # PyTorch parity: downcast to x.dtype before multiplying by f32 weight.
        normed = (x * inv).astype(x_ref.dtype)
        o_ref[...] = (normed * w_ref[...]).astype(o_ref.dtype)
    else:
        # Relaxed fast path (out_dtype == x.dtype): fuse epilogue, single cast.
        o_ref[...] = ((x * inv) * w_ref[...].astype(jnp.float32)).astype(o_ref.dtype)


def _rmsnorm_folded_kernel(x_ref, w_ref, fold_ref, bcast_ref, o_ref, *,
                           eps, inv_dim, exact_cast):
    """Folded path: `groups` logical rows share the lane axis (g_dim = groups*dim).

    fold_ref : (g_dim, groups) f32, fold[l, s]  = 1 if l // dim == s
    bcast_ref: (groups, g_dim) f32, bcast[s, l] = 1 if l // dim == s
    Both are resident inputs built once in the wrapper (nothing rebuilt per step).
    """
    x = x_ref[...].astype(jnp.float32)                        # (tr, g_dim)
    xx = x * x
    ss = jnp.dot(xx, fold_ref[...],
                 preferred_element_type=jnp.float32)          # (tr, groups) segmented sums
    inv_small = jax.lax.rsqrt(ss * inv_dim + eps)             # (tr, groups)
    inv = jnp.dot(inv_small, bcast_ref[...],
                  preferred_element_type=jnp.float32)         # (tr, g_dim) lane-replicated
    if exact_cast:
        normed = (x * inv).astype(x_ref.dtype)
        o_ref[...] = (normed * w_ref[...]).astype(o_ref.dtype)
    else:
        o_ref[...] = ((x * inv) * w_ref[...].astype(jnp.float32)).astype(o_ref.dtype)


def _round8_up(n):
    return ((n + 7) // 8) * 8


def rmsnorm(x, weight, eps=1e-6, *, out_dtype=None):
    """RMSNorm over the last axis of `x`, scaled by `weight` (shape [dim]).

    out_dtype=None reproduces PyTorch promotion (bf16 in -> f32 out).  Pass
    out_dtype=x.dtype to halve store traffic when that relaxation is OK.
    """
    orig_shape = x.shape
    dim = orig_shape[-1]
    assert weight.shape == (dim,)

    rows = math.prod(orig_shape[:-1]) if len(orig_shape) > 1 else 1

    promoted = jnp.result_type(x.dtype, weight.dtype)
    if out_dtype is None:
        out_dtype = promoted
    out_dtype = jnp.dtype(out_dtype)
    # Exact parity needs the intermediate downcast to x.dtype; the relaxed
    # (out_dtype == x.dtype != promoted) path fuses the epilogue instead.
    exact_cast = out_dtype == jnp.dtype(promoted)

    # ---- Lane-densify: fold rows so the stored last dim is a multiple of 128.
    groups = 1
    if dim % 128 != 0:
        folded_dim = math.lcm(dim, 128)
        g = folded_dim // dim
        # Keep the fold matrices (and per-row MXU work) small.
        if g > 1 and rows % g == 0 and folded_dim <= 512:
            groups = g
    # TODO(synk): dims that are neither 128-multiples nor foldable (rows % g != 0
    # or lcm > 512) still fall through to masked partial stores.
    g_rows = rows // groups
    g_dim = dim * groups

    x2d = x.reshape(g_rows, g_dim)
    w2d = (jnp.tile(weight, groups) if groups > 1 else weight).reshape(1, g_dim)

    in_bytes = jnp.dtype(x.dtype).itemsize
    out_bytes = out_dtype.itemsize

    # ---- Row tile: double-buffered in/out tiles + ~3 f32 temporaries per element,
    # sized to a 32 MiB working budget (fits v7x's 64 MiB VMEM on every gen),
    # capped at 1024 rows (no HBM-roofline gain past ~512-1024-row tiles).
    bytes_per_row = g_dim * (2 * in_bytes + 2 * out_bytes + 3 * 4)
    work_budget = 32 << 20
    tr = max(8, min(int(work_budget // bytes_per_row), 1024))
    tr = (tr // 8) * 8
    # TODO(synk): very large dim (>= 32K f32) would want a two-pass dim-chunked
    # path on v7x; here tr simply bottoms out at 8 rows.

    if g_rows <= 8:
        tr = g_rows
        steps = 1
    else:
        # >= 4 grid steps when rows permit (DMA/compute/writeback overlap) and an
        # even step count so v7x's two TensorCores get balanced halves.
        steps = pl.cdiv(g_rows, tr)
        max_steps = g_rows // 8
        steps = max(steps, min(4, max_steps))
        if steps > 1 and steps % 2 == 1 and steps + 1 <= max_steps:
            steps += 1
        tr = min(_round8_up(pl.cdiv(g_rows, steps)), g_rows)
        steps = pl.cdiv(g_rows, tr)
    grid = (steps,)

    # ---- VMEM request: actual need (double-buffered tiles + temps + residents)
    # plus headroom, not a fixed fraction of physical VMEM.
    resident_bytes = g_dim * 4 * (1 + 2 * groups)
    need = tr * g_dim * (2 * in_bytes + 2 * out_bytes + 3 * 4) + resident_bytes
    vmem_limit = int(min(max(2 * need, 16 << 20), 56 << 20))

    if groups > 1:
        lane_seg = jnp.arange(g_dim, dtype=jnp.int32) // dim          # (g_dim,)
        seg_ids = jnp.arange(groups, dtype=jnp.int32)                 # (groups,)
        bcast = (seg_ids[:, None] == lane_seg[None, :]).astype(jnp.float32)  # (groups, g_dim)
        fold = bcast.T                                                 # (g_dim, groups)

        kernel = functools.partial(_rmsnorm_folded_kernel, eps=float(eps),
                                   inv_dim=1.0 / dim, exact_cast=exact_cast)
        in_specs = [
            pl.BlockSpec((tr, g_dim), lambda i: (i, 0)),               # x rows tile
            pl.BlockSpec((1, g_dim), lambda i: (0, 0)),                # weight (resident)
            pl.BlockSpec((g_dim, groups), lambda i: (0, 0)),           # fold (resident)
            pl.BlockSpec((groups, g_dim), lambda i: (0, 0)),           # bcast (resident)
        ]
        args = (x2d, w2d, fold, bcast)
    else:
        kernel = functools.partial(_rmsnorm_kernel, eps=float(eps),
                                   inv_dim=1.0 / dim, exact_cast=exact_cast)
        in_specs = [
            pl.BlockSpec((tr, g_dim), lambda i: (i, 0)),               # x rows tile
            pl.BlockSpec((1, g_dim), lambda i: (0, 0)),                # weight (resident)
        ]
        args = (x2d, w2d)

    out2d = pl.pallas_call(
        kernel,
        out_shape=jax.ShapeDtypeStruct((g_rows, g_dim), out_dtype),
        grid_spec=pltpu.PrefetchScalarGridSpec(
            num_scalar_prefetch=0,
            grid=grid,
            in_specs=in_specs,
            out_specs=pl.BlockSpec((tr, g_dim), lambda i: (i, 0)),
        ),
        compiler_params=pltpu.CompilerParams(
            dimension_semantics=("parallel",),
            vmem_limit_bytes=vmem_limit,
        ),
    )(*args)

    return out2d.reshape(orig_shape)


def rmsnorm_reference(x, weight, eps=1e-6):
    xf = x.astype(jnp.float32)
    normed = xf * jax.lax.rsqrt(jnp.mean(xf * xf, axis=-1, keepdims=True) + eps)
    return normed.astype(x.dtype) * weight


if __name__ == "__main__":
    key = jax.random.PRNGKey(0)

    # 1) f32, small hidden dim (dim=32 -> folded, groups=4, lane-dense 128 stores).
    batch, seq, hidden = 2, 8, 32
    x = jax.random.normal(key, (batch, seq, hidden), dtype=jnp.float32)
    weight = jnp.ones((hidden,), dtype=jnp.float32)   # nn.Parameter(torch.ones(dim))
    out = jax.block_until_ready(rmsnorm(x, weight, eps=1e-6))
    ref = rmsnorm_reference(x, weight, eps=1e-6)
    assert out.shape == x.shape and out.dtype == ref.dtype
    assert jnp.allclose(out, ref, atol=1e-5, rtol=1e-5), "mismatch (f32 folded path)"

    # 2) f32, dim=192 (lcm fold -> g_dim=384, unmasked stores).
    x1 = jax.random.normal(jax.random.PRNGKey(2), (2, 8, 192), dtype=jnp.float32)
    w1 = jnp.ones((192,), dtype=jnp.float32)
    out1 = jax.block_until_ready(rmsnorm(x1, w1, eps=1e-6))
    ref1 = rmsnorm_reference(x1, w1, eps=1e-6)
    assert jnp.allclose(out1, ref1, atol=1e-5, rtol=1e-5), "mismatch (lcm-folded path)"

    # 3) bf16 input, dim=256, default out_dtype (PyTorch parity: f32 output, 4-step grid).
    x2 = jax.random.normal(jax.random.PRNGKey(1), (4, 8, 256), dtype=jnp.bfloat16)
    w2 = jnp.ones((256,), dtype=jnp.float32)
    out2 = jax.block_until_ready(rmsnorm(x2, w2, eps=1e-6))
    ref2 = rmsnorm_reference(x2, w2, eps=1e-6)
    assert out2.shape == x2.shape and out2.dtype == ref2.dtype
    assert jnp.allclose(out2.astype(jnp.float32), ref2.astype(jnp.float32),
                        atol=2e-2, rtol=2e-2), "mismatch (bf16 parity path)"

    # 4) bf16 fast path: out_dtype=x.dtype (fused epilogue, bf16 stores).
    out3 = jax.block_until_ready(rmsnorm(x2, w2, eps=1e-6, out_dtype=x2.dtype))
    assert out3.dtype == jnp.bfloat16
    assert jnp.allclose(out3.astype(jnp.float32), ref2.astype(jnp.float32),
                        atol=2e-2, rtol=2e-2), "mismatch (bf16 fast path)"

    print("KERNEL_OK")
</pallas_src>

<mosaic_0001>
module attributes {stable_mosaic.version = 11 : i64} {
  func.func @_rmsnorm_folded_kernel(%arg0: i32, %arg1: memref<4x128xf32, #tpu.memory_space<vmem>>, %arg2: memref<1x128xf32, #tpu.memory_space<vmem>>, %arg3: memref<128x4xf32, #tpu.memory_space<vmem>>, %arg4: memref<4x128xf32, #tpu.memory_space<vmem>>, %arg5: memref<4x128xf32, #tpu.memory_space<vmem>>) attributes {dimension_semantics = [#tpu.dimension_semantics<parallel>], iteration_bounds = array<i64: 1>, scalar_prefetch = 0 : i64, scratch_operands = 0 : i64, tpu.core_type = #tpu.core_type<tc>, window_params = [{transform_indices = @transform_0, window_bounds = array<i64: 4, 128>}, {pipeline_mode = #tpu.pipeline_mode<synchronous>, transform_indices = @transform_1, window_bounds = array<i64: 1, 128>}, {pipeline_mode = #tpu.pipeline_mode<synchronous>, transform_indices = @transform_2, window_bounds = array<i64: 128, 4>}, {pipeline_mode = #tpu.pipeline_mode<synchronous>, transform_indices = @transform_3, window_bounds = array<i64: 4, 128>}, {transform_indices = @transform_4, window_bounds = array<i64: 4, 128>}]} {
    %c0 = arith.constant 0 : index
    %c0_0 = arith.constant 0 : index
    %0 = vector.load %arg1[%c0, %c0_0] : memref<4x128xf32, #tpu.memory_space<vmem>>, vector<4x128xf32>
    %1 = arith.mulf %0, %0 : vector<4x128xf32>
    %c0_1 = arith.constant 0 : index
    %c0_2 = arith.constant 0 : index
    %2 = vector.load %arg3[%c0_1, %c0_2] : memref<128x4xf32, #tpu.memory_space<vmem>>, vector<128x4xf32>
    %cst = arith.constant dense<0.000000e+00> : vector<4x4xf32>
    %3 = tpu.matmul %1, %2, %cst {dimension_numbers = #tpu.dot_dimension_numbers<[1], [0], [0], [1], [0, 0, 1, 1], [], []>} : vector<4x128xf32>, vector<128x4xf32>, vector<4x4xf32> -> vector<4x4xf32>
    %cst_3 = arith.constant 3.125000e-02 : f32
    %4 = vector.broadcast %cst_3 : f32 to vector<4x4xf32>
    %5 = arith.mulf %3, %4 : vector<4x4xf32>
    %cst_4 = arith.constant 9.99999997E-7 : f32
    %6 = vector.broadcast %cst_4 : f32 to vector<4x4xf32>
    %7 = arith.addf %5, %6 : vector<4x4xf32>
    %8 = math.rsqrt %7 : vector<4x4xf32>
    %c0_5 = arith.constant 0 : index
    %c0_6 = arith.constant 0 : index
    %9 = vector.load %arg4[%c0_5, %c0_6] : memref<4x128xf32, #tpu.memory_space<vmem>>, vector<4x128xf32>
    %cst_7 = arith.constant dense<0.000000e+00> : vector<4x128xf32>
    %10 = tpu.matmul %8, %9, %cst_7 {dimension_numbers = #tpu.dot_dimension_numbers<[1], [0], [0], [1], [0, 0, 1, 1], [], []>} : vector<4x4xf32>, vector<4x128xf32>, vector<4x128xf32> -> vector<4x128xf32>
    %11 = arith.mulf %0, %10 : vector<4x128xf32>
    %c0_8 = arith.constant 0 : index
    %c0_9 = arith.constant 0 : index
    %12 = vector.load %arg2[%c0_8, %c0_9] : memref<1x128xf32, #tpu.memory_space<vmem>>, vector<1x128xf32>
    %13 = vector.broadcast %12 : vector<1x128xf32> to vector<4x128xf32>
    %14 = arith.mulf %11, %13 : vector<4x128xf32>
    %c0_10 = arith.constant 0 : index
    %c0_11 = arith.constant 0 : index
    %15 = vector.load %arg5[%c0_10, %c0_11] : memref<4x128xf32, #tpu.memory_space<vmem>>, vector<4x128xf32>
    tpu.vector_store %arg5[%c0_10, %c0_11], %14 {strides = array<i32>} : memref<4x128xf32, #tpu.memory_space<vmem>>, vector<4x128xf32>,
    return
  }
  func.func @transform_0(%arg0: i32) -> (i32, i32) {
    %c0_i32 = arith.constant 0 : i32
    %c0_i32_0 = arith.constant 0 : i32
    return %arg0, %c0_i32 : i32, i32
  }
  func.func @transform_1(%arg0: i32) -> (i32, i32) {
    %c0_i32 = arith.constant 0 : i32
    %c0_i32_0 = arith.constant 0 : i32
    %c0_i32_1 = arith.constant 0 : i32
    return %c0_i32, %c0_i32_0 : i32, i32
  }
  func.func @transform_2(%arg0: i32) -> (i32, i32) {
    %c0_i32 = arith.constant 0 : i32
    %c0_i32_0 = arith.constant 0 : i32
    %c0_i32_1 = arith.constant 0 : i32
    return %c0_i32, %c0_i32_0 : i32, i32
  }
  func.func @transform_3(%arg0: i32) -> (i32, i32) {
    %c0_i32 = arith.constant 0 : i32
    %c0_i32_0 = arith.constant 0 : i32
    %c0_i32_1 = arith.constant 0 : i32
    return %c0_i32, %c0_i32_0 : i32, i32
  }
  func.func @transform_4(%arg0: i32) -> (i32, i32) {
    %c0_i32 = arith.constant 0 : i32
    %c0_i32_0 = arith.constant 0 : i32
    return %arg0, %c0_i32 : i32, i32
  }
}

</mosaic_0001>

<bundles_post_ra>
// kernel: tpu_custom_call.1
= control target key start
LH: loop header
LB: loop body
LE: loop exit
PB: predicated region body
PF: predicated region fallthrough
CT: control target
= control target key end

     0   :  { %v328_v3 = vmov 0.0|0.0   ;;  %vm329_vm0 = vmmov 0   ;;  %v330_v6 = vmov 0.0   ;;  %s426_s0 = inlined_call_operand.vmem [shape: f32[4,128], index: 0, kind: input, shape index: {}]   ;;  %s427_s1 = inlined_call_operand.vmem [shape: f32[1,128], index: 1, kind: input, shape index: {}]   ;;  %s428_s2 = inlined_call_operand.vmem [shape: f32[128,4], index: 2, kind: input, shape index: {}]   ;;  %s429_s3 = inlined_call_operand.vmem [shape: f32[4,128], index: 3, kind: input, shape index: {}]   ;;  %s430_s4 = inlined_call_operand.hbm [shape: f32[4,128], index: 4, kind: output, shape index: {}]  }
   0x1   :  { %v20_v0 = vld [vmem:[%s428_s2] sm:$0xff]  ;;  %v21_v1 = vld [vmem:[%s428_s2 + $0x8] sm:$0xff]  ;;  %v22_v2 = vld [vmem:[%s428_s2 + $0x10] sm:$0xff]  ;;  %274 = vmatprep.subr.bf16.mxu0 %v328_v3  ;;  %266 = vmatprep.mubr.msk.f32.mxu0 %vm329_vm0, %v330_v6 }
   0x2   :  { %v275_v4 = vpack.c.bf16 %v21_v1, %v20_v0  ;;  %v23_v5 = vld [vmem:[%s428_s2 + $0x18] sm:$0xff]  ;;  %269 = vmatprep.subr.mxu1 %v330_v6  ;;  %271 = vmatprep.mubr.msk.f32.mxu1 %vm329_vm0, %v330_v6  ;;  %v24_v8 = vld [vmem:[%s428_s2 + $0x20] sm:$0xff]  ;;  %v25_v9 = vld [vmem:[%s428_s2 + $0x28] sm:$0xff] }
   0x3   :  { %v278_v7 = vpack.c.bf16 %v23_v5, %v22_v2 }
   0x4   :  { %276 = vmatpush3.bf16.msra.mxu0 %v275_v4 }
   0x5   :  { %277 = vmatprep.subr.bf16.mxu0 %v328_v3 }
   0x6   :  { %9 = vsyncpa [#allocation3], 0  ;;  %v281_v10 = vpack.c.bf16 %v25_v9, %v24_v8  ;;  %v26_v11 = vld [vmem:[%s428_s2 + $0x30] sm:$0xff]  ;;  %v27_v12 = vld [vmem:[%s428_s2 + $0x38] sm:$0xff]  ;;  %vm114_vm1 = vcmask 1043456   ;;  %vm110_vm2 = vcmask 31744  }
   0x7   :  { %v284_v13 = vpack.c.bf16 %v27_v12, %v26_v11  ;;  %v28_v14 = vld [vmem:[%s428_s2 + $0x40] sm:$0xff]  ;;  %v29_v15 = vld [vmem:[%s428_s2 + $0x48] sm:$0xff]  ;;  %v30_v17 = vld [vmem:[%s428_s2 + $0x50] sm:$0xff]  ;;  %s331_s25 = smov [#allocation2]  }
   0x8   :  { %279 = vmatpush3.bf16.msra.mxu0 %v278_v7  ;;  %v287_v16 = vpack.c.bf16 %v29_v15, %v28_v14  ;;  %v31_v18 = vld [vmem:[%s428_s2 + $0x58] sm:$0xff]  ;;  %v32_v20 = vld [vmem:[%s428_s2 + $0x60] sm:$0xff]  ;;  %v33_v21 = vld [vmem:[%s428_s2 + $0x68] sm:$0xff]  ;;  %s204_s26 = sshll.u32 %s331_s25, 4  ;;  %s205_s26 = int_to_ptr.vmem [resolvable:$true] %s204_s26 }
   0x9   :  { %280 = vmatprep.subr.bf16.mxu0 %v328_v3  ;;  %v290_v19 = vpack.c.bf16 %v31_v18, %v30_v17  ;;  %v293_v22 = vpack.c.bf16 %v33_v21, %v32_v20  ;;  %v34_v23 = vld [vmem:[%s428_s2 + $0x70] sm:$0xff]  ;;  %v35_v24 = vld [vmem:[%s428_s2 + $0x78] sm:$0xff]  ;;  %v18_v26 = vld [vmem:[%s426_s0] sm:$0xf]  ;;  %p309_p1 = scmp.lt.s32.totalorder %s205_s26, %s205_s26 }
   0xa   :  { %v296_v25 = vpack.c.bf16 %v35_v24, %v34_v23  ;;  %v19_v27 = vmul.f32 %v18_v26, %v18_v26  ;;  %v109_v28 = vld [vmem:[%s429_s3] sm:$0xf]  ;;  %s304_s3 = scalar_lea.vmem %s205_s26, 64 }
   0xb   :  { %270 = vmatpush3.msk.msra.mxu1 %vm114_vm1, %v109_v28  ;;  %v214_v35 = vld [vmem:[%s427_s1] ss:$0 sm:$0xff]  ;;  %p305_p0 = scmp.ne.s32.totalorder %s205_s26, %s304_s3  ;;  %p310_p2 = scmp.lt.s32.totalorder %s304_s3, %s304_s3 }
   0xc   :  { %282 = vmatpush3.bf16.msra.mxu0 %v281_v10 }
   0xd   :  { %283 = vmatprep.subr.bf16.mxu0 %v328_v3  ;;  %p311_p3 = por %p310_p2, %p309_p1 }
   0xf   :  { %p312_p4 = pnand %p311_p3, %p305_p0 }
  0x10   :  { %285 = vmatpush3.bf16.msra.mxu0 %v284_v13 }
  0x11   :  { %286 = vmatprep.subr.bf16.mxu0 %v328_v3 }
  0x14   :  { %288 = vmatpush3.bf16.msra.mxu0 %v287_v16 }
  0x15   :  { %289 = vmatprep.subr.bf16.mxu0 %v328_v3 }
  0x18   :  { %291 = vmatpush3.bf16.msra.mxu0 %v290_v19 }
  0x19   :  { %292 = vmatprep.subr.bf16.mxu0 %v328_v3 }
  0x1c   :  { %294 = vmatpush3.bf16.msra.mxu0 %v293_v22 }
  0x1d   :  { %295 = vmatprep.subr.bf16.mxu0 %v328_v3 }
  0x20   :  { %297 = vmatpush3.bf16.msra.mxu0 %v296_v25 }
  0x23   :  { %267 = vmatmul.mubr.f32.vlgmr.msra.gmra.mrb[0].mxu0 %v19_v27 }
  0xf6   :  { %v102_v29 = vpop.f32.mrb[0].mxu0 }
  0xf7   :  { %v106_v30 = vmul.f32 0.03125, %v102_v29  ;;  %v268_v31 = vpop.f32.mrb[1].mxu0 }
  0xf9   :  { %v107_v32 = vadd.f32 1e-06, %v106_v30 }
  0xfb   :  { %302 = vrsqrt.f32 %v107_v32 }
 0x105   :  { %v303_v33 = vpop.eup %302 }
 0x106   :  { %272 = vmatmul.mubr.msk.f32.vlgmr.msra.gmra.mrb[0].mxu1 %vm110_vm2, %v303_v33 }
 0x1d9   :  { %v184_v34 = vpop.f32.mrb[0].mxu1 }
 0x1da   :  { %v188_v36 = vmul.f32 %v184_v34, %v18_v26  ;;  %v273_v37 = vpop.f32.mrb[1].mxu1 }
 0x1dc   :  { %v196_v38 = vmul.f32 %v214_v35, %v188_v36 }
 0x1de   :  { %197 = vst [vmem:[#allocation2] sm:$0xf] %v196_v38 }
 0x1df   :  { %315 = shalt.err (!%p312_p4)
}
 0x1e0   :  { %s316_s29 = scalar_lea.hbm %s430_s4, 64 }
 0x1e1   :  { %p317_p5 = scmp.ne.s32.totalorder %s430_s4, %s316_s29  ;;  %p320_p6 = scmp.lt.u32.totalorder %s316_s29, %s430_s4 }
 0x1e3   :  { %p322_p7 = pnand %p320_p6, %p317_p5 }
 0x1e5   :  { %325 = shalt.err (!%p322_p7)
}
 0x1e6   :  { %207 = dma.vmem_to_hbm [thread:$0]  %s205_s26, 64, %s430_s4, [#allocation3]  }
 0x1e7   :  { %326 = dma.done.wait [#allocation3], 64  }
 0x1e8   :  { %327 = vsyncadd [#allocation3], 4294967232 }
 0x1e9   :  { %211 = vsyncpa [#allocation3], 1 }

</bundles_post_ra>
